<compile_context>
chip_gen: v5e
topology: v5e:2x2
jax: 0.10.0
libtpu: 0.0.40
codegen_flags: <defaults>
</compile_context>

<pallas_src>
import functools

import jax
import jax.numpy as jnp
from jax.experimental import pallas as pl
from jax.experimental.pallas import tpu as pltpu

KH = KW = 3  # 3x3 conv, stride 1, padding 1


def twin_conv_kernel(x_ref, w_ref, b_ref, o_ref):
    """One image per grid step.

    x_ref : (H+2, (W+2)*Cin)   bf16 halo'd NHWC rows, lanes = (W+2)*Cin
    w_ref : (KH, (W+2)*Cin, W*Cout)  f32 banded (pre-blended) weights
    b_ref : (1, W*Cout)        f32 tiled bias
    o_ref : (H, W*Cout)        f32 packed NHWC output rows (lane-dense)
    """
    h_out = o_ref.shape[0]
    # Single full-block load, one bf16->f32 upcast; row-shifted slices are
    # plain f32 sublane slices (no packed-dtype slicing needed).
    x = x_ref[...].astype(jnp.float32)

    acc = jnp.zeros(o_ref.shape, dtype=jnp.float32)
    for dy in range(KH):  # 3 MXU matmuls, accumulate in f32
        acc = acc + jnp.dot(
            x[dy:dy + h_out, :], w_ref[dy],
            preferred_element_type=jnp.float32)

    o_ref[...] = (acc + b_ref[...]).astype(o_ref.dtype)  # unmasked lane-dense store


@functools.partial(jax.jit, static_argnames=("r",))
def twin_conv(x_nchw, w1, b1, w2, b2, *, r):
    """x_nchw: (N, Cin, H, W); w*: (Cout, Cin, 3, 3); b*: (Cout,); r: float."""
    n, cin, h, w = x_nchw.shape
    cout = w1.shape[0]
    r = float(r)  # compile-time constant -> baked into the blended weights

    # ---- forward-exact pre-blend of the twin convs (linear in weights) ------
    w_blend = (1.0 - r) * w1.astype(jnp.float32) + r * w2.astype(jnp.float32)
    b_blend = (1.0 - r) * b1.astype(jnp.float32) + r * b2.astype(jnp.float32)

    # ---- banded weight: B[dy, (w+dx)*Cin+ci, w*Cout+co] = w_blend[co,ci,dy,dx]
    k = jnp.transpose(w_blend, (2, 3, 1, 0))              # (KH, KW, Cin, Cout)
    wp = jnp.arange(w + 2)                                # padded column index
    wo = jnp.arange(w)                                    # output column index
    dx = wp[:, None] - wo[None, :]                        # (W+2, W)
    valid = (dx >= 0) & (dx < KW)
    dx_c = jnp.clip(dx, 0, KW - 1)
    banded = k[:, dx_c]                                   # (KH, W+2, W, Cin, Cout)
    banded = jnp.where(valid[None, :, :, None, None], banded, 0.0)
    w_banded = jnp.transpose(banded, (0, 1, 3, 2, 4)).reshape(
        KH, (w + 2) * cin, w * cout)                      # f32, tiny, read once

    b_tiled = jnp.tile(b_blend, w).reshape(1, w * cout)   # f32, (1, W*Cout)

    # ---- input: NHWC + 1-pixel halo, rows flattened, bf16 HBM stream --------
    x_nhwc = jnp.transpose(x_nchw, (0, 2, 3, 1))
    x_pad = jnp.pad(x_nhwc, ((0, 0), (1, 1), (1, 1), (0, 0)))
    x_rows = x_pad.reshape(n, h + 2, (w + 2) * cin).astype(jnp.bfloat16)

    kdim = (w + 2) * cin
    ndim = w * cout
    cost = pl.CostEstimate(
        flops=2 * n * KH * h * kdim * ndim,
        transcendentals=0,
        bytes_accessed=(x_rows.size * 2 + w_banded.size * 4
                        + b_tiled.size * 4 + n * h * ndim * 4),
    )

    out2d = pl.pallas_call(
        twin_conv_kernel,
        out_shape=jax.ShapeDtypeStruct((n, h, ndim), jnp.float32),
        grid=(n,),
        in_specs=[
            pl.BlockSpec((None, h + 2, kdim), lambda i: (i, 0, 0)),  # x rows
            pl.BlockSpec((KH, kdim, ndim), lambda i: (0, 0, 0)),     # weights (resident)
            pl.BlockSpec((1, ndim), lambda i: (0, 0)),               # bias (resident)
        ],
        out_specs=pl.BlockSpec((None, h, ndim), lambda i: (i, 0, 0)),
        compiler_params=pltpu.CompilerParams(
            dimension_semantics=("parallel",)),
        cost_estimate=cost,
    )(x_rows, w_banded, b_tiled)

    # Packed rows are exactly NHWC: reshape is free; one transpose back to NCHW
    # to match the PyTorch module's output layout (skip if consumer wants NHWC).
    out = out2d.reshape(n, h, w, cout)
    return jnp.transpose(out, (0, 3, 1, 2))


def _reference(x_nchw, w1, b1, w2, b2, r):
    """Pure-JAX f32 reference (lax conv) mirroring the two nn.Conv2d calls."""
    def conv(x, wt, b):
        y = jax.lax.conv_general_dilated(
            x, wt, window_strides=(1, 1), padding=((1, 1), (1, 1)),
            dimension_numbers=("NCHW", "OIHW", "NCHW"))
        return y + b[None, :, None, None]
    x1 = conv(x_nchw, w1, b1)   # .detach() -> no-op in forward
    x2 = conv(x_nchw, w2, b2)
    return x1 * (1.0 - r) + x2 * r


if __name__ == "__main__":
    # Small deterministic setup consistent with the module: two
    # Conv2d(Cin=4, Cout=8, k=3, padding=1) "twins" and a blend scalar r.
    N, CIN, H, W, COUT = 2, 4, 16, 16, 8   # W*Cout = 128 -> exactly lane-dense
    R = 0.3

    key = jax.random.PRNGKey(0)
    kx, k1w, k1b, k2w, k2b = jax.random.split(key, 5)
    x = jax.random.normal(kx, (N, CIN, H, W), dtype=jnp.float32)
    w1 = jax.random.normal(k1w, (COUT, CIN, KH, KW), dtype=jnp.float32) * 0.1
    b1 = jax.random.normal(k1b, (COUT,), dtype=jnp.float32) * 0.1
    w2 = jax.random.normal(k2w, (COUT, CIN, KH, KW), dtype=jnp.float32) * 0.1
    b2 = jax.random.normal(k2b, (COUT,), dtype=jnp.float32) * 0.1

    out = twin_conv(x, w1, b1, w2, b2, r=R)
    jax.block_until_ready(out)

    ref = _reference(x, w1, b1, w2, b2, R)
    assert out.shape == (N, COUT, H, W)
    # Tolerance loosened: the activation stream is carried in bfloat16
    # (accumulation is f32), the reference is pure f32.
    assert jnp.allclose(out, ref, atol=3e-2, rtol=3e-2), "mismatch vs reference"

    print("KERNEL_OK")
</pallas_src>

<mosaic_0001>
module attributes {stable_mosaic.version = 11 : i64} {
  func.func @twin_conv_kernel(%arg0: i32, %arg1: memref<1x18x72xbf16, #tpu.memory_space<vmem>>, %arg2: memref<3x72x128xf32, #tpu.memory_space<vmem>>, %arg3: memref<1x128xf32, #tpu.memory_space<vmem>>, %arg4: memref<1x16x128xf32, #tpu.memory_space<vmem>>) attributes {dimension_semantics = [#tpu.dimension_semantics<parallel>], iteration_bounds = array<i64: 2>, scalar_prefetch = 0 : i64, scratch_operands = 0 : i64, tpu.core_type = #tpu.core_type<tc>, window_params = [{transform_indices = @transform_0, window_bounds = array<i64: 1, 18, 72>}, {pipeline_mode = #tpu.pipeline_mode<synchronous>, transform_indices = @transform_1, window_bounds = array<i64: 3, 72, 128>}, {pipeline_mode = #tpu.pipeline_mode<synchronous>, transform_indices = @transform_2, window_bounds = array<i64: 1, 128>}, {transform_indices = @transform_3, window_bounds = array<i64: 1, 16, 128>}]} {
    %c0 = arith.constant 0 : index
    %c0_0 = arith.constant 0 : index
    %c0_1 = arith.constant 0 : index
    %0 = vector.load %arg1[%c0, %c0_0, %c0_1] : memref<1x18x72xbf16, #tpu.memory_space<vmem>>, vector<1x18x72xbf16>
    %1 = vector.shape_cast %0 : vector<1x18x72xbf16> to vector<18x72xbf16>
    %2 = arith.extf %1 : vector<18x72xbf16> to vector<18x72xf32>
    %cst = arith.constant 0.000000e+00 : f32
    %3 = vector.broadcast %cst : f32 to vector<16x128xf32>
    %4 = vector.extract_strided_slice %2 {offsets = [0, 0], sizes = [16, 72], strides = [1, 1]} : vector<18x72xf32> to vector<16x72xf32>
    %c0_2 = arith.constant 0 : index
    %c0_3 = arith.constant 0 : index
    %c0_4 = arith.constant 0 : index
    %5 = vector.load %arg2[%c0_2, %c0_3, %c0_4] : memref<3x72x128xf32, #tpu.memory_space<vmem>>, vector<1x72x128xf32>
    %6 = vector.shape_cast %5 : vector<1x72x128xf32> to vector<72x128xf32>
    %cst_5 = arith.constant dense<0.000000e+00> : vector<16x128xf32>
    %7 = tpu.matmul %4, %6, %cst_5 {dimension_numbers = #tpu.dot_dimension_numbers<[1], [0], [0], [1], [0, 0, 1, 1], [], []>} : vector<16x72xf32>, vector<72x128xf32>, vector<16x128xf32> -> vector<16x128xf32>
    %8 = arith.addf %3, %7 : vector<16x128xf32>
    %9 = vector.extract_strided_slice %2 {offsets = [1, 0], sizes = [16, 72], strides = [1, 1]} : vector<18x72xf32> to vector<16x72xf32>
    %c1 = arith.constant 1 : index
    %c0_6 = arith.constant 0 : index
    %c0_7 = arith.constant 0 : index
    %10 = vector.load %arg2[%c1, %c0_6, %c0_7] : memref<3x72x128xf32, #tpu.memory_space<vmem>>, vector<1x72x128xf32>
    %11 = vector.shape_cast %10 : vector<1x72x128xf32> to vector<72x128xf32>
    %cst_8 = arith.constant dense<0.000000e+00> : vector<16x128xf32>
    %12 = tpu.matmul %9, %11, %cst_8 {dimension_numbers = #tpu.dot_dimension_numbers<[1], [0], [0], [1], [0, 0, 1, 1], [], []>} : vector<16x72xf32>, vector<72x128xf32>, vector<16x128xf32> -> vector<16x128xf32>
    %13 = arith.addf %8, %12 : vector<16x128xf32>
    %14 = vector.extract_strided_slice %2 {offsets = [2, 0], sizes = [16, 72], strides = [1, 1]} : vector<18x72xf32> to vector<16x72xf32>
    %c2 = arith.constant 2 : index
    %c0_9 = arith.constant 0 : index
    %c0_10 = arith.constant 0 : index
    %15 = vector.load %arg2[%c2, %c0_9, %c0_10] : memref<3x72x128xf32, #tpu.memory_space<vmem>>, vector<1x72x128xf32>
    %16 = vector.shape_cast %15 : vector<1x72x128xf32> to vector<72x128xf32>
    %cst_11 = arith.constant dense<0.000000e+00> : vector<16x128xf32>
    %17 = tpu.matmul %14, %16, %cst_11 {dimension_numbers = #tpu.dot_dimension_numbers<[1], [0], [0], [1], [0, 0, 1, 1], [], []>} : vector<16x72xf32>, vector<72x128xf32>, vector<16x128xf32> -> vector<16x128xf32>
    %18 = arith.addf %13, %17 : vector<16x128xf32>
    %c0_12 = arith.constant 0 : index
    %c0_13 = arith.constant 0 : index
    %19 = vector.load %arg3[%c0_12, %c0_13] : memref<1x128xf32, #tpu.memory_space<vmem>>, vector<1x128xf32>
    %20 = vector.broadcast %19 : vector<1x128xf32> to vector<16x128xf32>
    %21 = arith.addf %18, %20 : vector<16x128xf32>
    %c0_14 = arith.constant 0 : index
    %c0_15 = arith.constant 0 : index
    %c0_16 = arith.constant 0 : index
    %22 = vector.load %arg4[%c0_14, %c0_15, %c0_16] : memref<1x16x128xf32, #tpu.memory_space<vmem>>, vector<1x16x128xf32>
    %23 = vector.shape_cast %22 : vector<1x16x128xf32> to vector<16x128xf32>
    %24 = vector.shape_cast %21 : vector<16x128xf32> to vector<1x16x128xf32>
    tpu.vector_store %arg4[%c0_14, %c0_15, %c0_16], %24 {strides = array<i32>} : memref<1x16x128xf32, #tpu.memory_space<vmem>>, vector<1x16x128xf32>,
    return
  }
  func.func @transform_0(%arg0: i32) -> (i32, i32, i32) {
    %c0_i32 = arith.constant 0 : i32
    %c0_i32_0 = arith.constant 0 : i32
    %c0_i32_1 = arith.constant 0 : i32
    return %arg0, %c0_i32, %c0_i32_0 : i32, i32, i32
  }
  func.func @transform_1(%arg0: i32) -> (i32, i32, i32) {
    %c0_i32 = arith.constant 0 : i32
    %c0_i32_0 = arith.constant 0 : i32
    %c0_i32_1 = arith.constant 0 : i32
    %c0_i32_2 = arith.constant 0 : i32
    return %c0_i32, %c0_i32_0, %c0_i32_1 : i32, i32, i32
  }
  func.func @transform_2(%arg0: i32) -> (i32, i32) {
    %c0_i32 = arith.constant 0 : i32
    %c0_i32_0 = arith.constant 0 : i32
    %c0_i32_1 = arith.constant 0 : i32
    return %c0_i32, %c0_i32_0 : i32, i32
  }
  func.func @transform_3(%arg0: i32) -> (i32, i32, i32) {
    %c0_i32 = arith.constant 0 : i32
    %c0_i32_0 = arith.constant 0 : i32
    %c0_i32_1 = arith.constant 0 : i32
    return %arg0, %c0_i32, %c0_i32_0 : i32, i32, i32
  }
}

</mosaic_0001>

<bundles_post_ra>
// kernel: tile.8
= control target key start
LH: loop header
LB: loop body
LE: loop exit
PB: predicated region body
PF: predicated region fallthrough
CT: control target
= control target key end

     0   :  { %s28_s0 = inlined_call_operand.vmem [shape: f32[8], index: 0, kind: input, shape index: {}]   ;;  %s29_s1 = inlined_call_operand.vmem [shape: f32[16,8], index: 1, kind: output, shape index: {}]  }
   0x1   :  { %v4_v0 = vld [vmem:[%s28_s0] ss:$0 sm:$0xff] }
   0x2   :  { %5 = vst [vmem:[%s29_s1] sm:$0xff] %v4_v0 }
   0x3   :  { %8 = vst [vmem:[%s29_s1 + $0x8] sm:$0xff] %v4_v0 }

// kernel: tile.9
= control target key start
LH: loop header
LB: loop body
LE: loop exit
PB: predicated region body
PF: predicated region fallthrough
CT: control target
= control target key end

     0   :  { %s131_s10 = smov 120   ;;  %s132_s11 = smov 104   ;;  %vm3_vm0 = vcmask 64512   ;;  %vm9_vm1 = vcmask 1048512   ;;  %vm15_vm2 = vcmask 982912   ;;  %vm21_vm3 = vcmask 917312   ;;  %s207_s0 = inlined_call_operand.vmem [shape: f32[16,8], index: 0, kind: input, shape index: {}]   ;;  %s208_s1 = inlined_call_operand.vmem [shape: f32[1,128], index: 1, kind: output, shape index: {}]  }
   0x1   :  { %v101_v0 = vld [vmem:[%s207_s0 + $0xf] sm:$0x1]   ;;  %v103_v1 = vld [vmem:[%s207_s0 + $0xd] sm:$0x1]   ;;  %v105_v2 = vld [vmem:[%s207_s0 + $0xb] sm:$0x1]  }
   0x2   :  { %7 = vrot.lane.b32.xlu0 %v101_v0, %s131_s10  ;;  %19 = vrot.lane.b32.xlu1 %v103_v1, %s132_s11  ;;  %s133_s14 = smov 88   ;;  %v102_v3 = vld [vmem:[%s207_s0 + $0xe] sm:$0x1]   ;;  %v104_v4 = vld [vmem:[%s207_s0 + $0xc] sm:$0x1]   ;;  %s134_s19 = smov 112  }
   0x3   :  { %31 = vrot.lane.b32.xlu2 %v105_v2, %s133_s14  ;;  %s135_s20 = smov 96   ;;  %v106_v5 = vld [vmem:[%s207_s0 + $0xa] sm:$0x1]   ;;  %s136_s23 = smov 80   ;;  %v107_v6 = vld [vmem:[%s207_s0 + $0x9] sm:$0x1]  }
   0x4   :  { %v108_v7 = vld [vmem:[%s207_s0 + $0x8] sm:$0x1]   ;;  %s137_s28 = smov 72   ;;  %s138_s29 = smov 64   ;;  %v109_v8 = vld [vmem:[%s207_s0 + $0x7] sm:$0x1]  }
   0x5   :  { %s139_s3 = smov 56   ;;  %v110_v9 = vld [vmem:[%s207_s0 + $0x6] sm:$0x1]   ;;  %v111_v10 = vld [vmem:[%s207_s0 + $0x5] sm:$0x1]   ;;  %s140_s8 = smov 48  }
   0x6   :  { %s141_s9 = smov 40   ;;  %v112_v11 = vld [vmem:[%s207_s0 + $0x4] sm:$0x1]   ;;  %s142_s12 = smov 32   ;;  %v113_v12 = vld [vmem:[%s207_s0 + $0x3] sm:$0x1]  }
   0x7   :  { %v114_v13 = vld [vmem:[%s207_s0 + $0x2] sm:$0x1]   ;;  %s143_s17 = smov 24   ;;  %s144_s18 = smov 16   ;;  %v115_v14 = vld [vmem:[%s207_s0 + $0x1] sm:$0x1]  }
   0x8   :  { %s145_s21 = smov 8   ;;  %v2_v15 = vld [vmem:[%s207_s0] sm:$0x1]   ;;  %vm27_vm4 = vcmask 851712   ;;  %vm33_vm5 = vcmask 786112   ;;  %vm39_vm6 = vcmask 720512  }
   0x9   :  { %4 = vst.msk [vmem:[#allocation0] sm:$0x1] %vm3_vm0, %v2_v15   ;;  %vm45_vm7 = vcmask 654912   ;;  %vm51_vm8 = vcmask 589312   ;;  %vm57_vm9 = vcmask 523712   ;;  %vm63_vm10 = vcmask 458112  }
   0xa   :  { %13 = vrot.lane.b32.xlu0 %v102_v3, %s134_s19  ;;  %25 = vrot.lane.b32.xlu1 %v104_v4, %s135_s20  ;;  %vm69_vm11 = vcmask 392512   ;;  %vm75_vm12 = vcmask 326912   ;;  %vm81_vm13 = vcmask 261312   ;;  %vm87_vm14 = vcmask 195712  }
   0xb   :  { %37 = vrot.lane.b32.xlu2 %v106_v5, %s136_s23  ;;  %vm93_vm15 = vcmask 130112  }
  0x12   :  { %43 = vrot.lane.b32.xlu0 %v107_v6, %s137_s28  ;;  %49 = vrot.lane.b32.xlu1 %v108_v7, %s138_s29 }
  0x13   :  { %55 = vrot.lane.b32.xlu2 %v109_v8, %s139_s3 }
  0x1a   :  { %61 = vrot.lane.b32.xlu0 %v110_v9, %s140_s8  ;;  %67 = vrot.lane.b32.xlu1 %v111_v10, %s141_s9 }
  0x1b   :  { %73 = vrot.lane.b32.xlu2 %v112_v11, %s142_s12 }
  0x22   :  { %79 = vrot.lane.b32.xlu0 %v113_v12, %s143_s17  ;;  %85 = vrot.lane.b32.xlu1 %v114_v13, %s144_s18 }
  0x23   :  { %91 = vrot.lane.b32.xlu2 %v115_v14, %s145_s21 }
  0x5d   :  { %v32_v16 = vpop.permute.xlu2 %31  }
  0x65   :  { %v38_v17 = vpop.permute.xlu2 %37  }
  0x6d   :  { %v56_v18 = vpop.permute.xlu2 %55  }
  0x74   :  { %v8_v19 = vpop.permute.xlu0 %7   ;;  %v20_v20 = vpop.permute.xlu1 %19  }
  0x75   :  { %10 = vst.msk [vmem:[#allocation0] sm:$0x1] %vm9_vm1, %v8_v19   ;;  %v74_v21 = vpop.permute.xlu2 %73  }
  0x7c   :  { %v14_v22 = vpop.permute.xlu0 %13   ;;  %v26_v23 = vpop.permute.xlu1 %25  }
  0x7d   :  { %16 = vst.msk [vmem:[#allocation0] sm:$0x1] %vm15_vm2, %v14_v22   ;;  %v92_v24 = vpop.permute.xlu2 %91  }
  0x7e   :  { %22 = vst.msk [vmem:[#allocation0] sm:$0x1] %vm21_vm3, %v20_v20  }
  0x7f   :  { %28 = vst.msk [vmem:[#allocation0] sm:$0x1] %vm27_vm4, %v26_v23  }
  0x80   :  { %34 = vst.msk [vmem:[#allocation0] sm:$0x1] %vm33_vm5, %v32_v16  }
  0x81   :  { %40 = vst.msk [vmem:[#allocation0] sm:$0x1] %vm39_vm6, %v38_v17  }
  0x84   :  { %v44_v25 = vpop.permute.xlu0 %43   ;;  %v50_v26 = vpop.permute.xlu1 %49  }
  0x85   :  { %46 = vst.msk [vmem:[#allocation0] sm:$0x1] %vm45_vm7, %v44_v25  }
  0x86   :  { %52 = vst.msk [vmem:[#allocation0] sm:$0x1] %vm51_vm8, %v50_v26  }
  0x87   :  { %58 = vst.msk [vmem:[#allocation0] sm:$0x1] %vm57_vm9, %v56_v18  }
  0x8c   :  { %v62_v27 = vpop.permute.xlu0 %61   ;;  %v68_v28 = vpop.permute.xlu1 %67  }
  0x8d   :  { %64 = vst.msk [vmem:[#allocation0] sm:$0x1] %vm63_vm10, %v62_v27  }
  0x8e   :  { %70 = vst.msk [vmem:[#allocation0] sm:$0x1] %vm69_vm11, %v68_v28  }
  0x8f   :  { %76 = vst.msk [vmem:[#allocation0] sm:$0x1] %vm75_vm12, %v74_v21  }
  0x94   :  { %v80_v29 = vpop.permute.xlu0 %79   ;;  %v86_v30 = vpop.permute.xlu1 %85  }
  0x95   :  { %82 = vst.msk [vmem:[#allocation0] sm:$0x1] %vm81_vm13, %v80_v29  }
  0x96   :  { %88 = vst.msk [vmem:[#allocation0] sm:$0x1] %vm87_vm14, %v86_v30  }
  0x97   :  { %94 = vst.msk [vmem:[#allocation0] sm:$0x1] %vm93_vm15, %v92_v24  }
  0x9e   :  { %v97_v31 = vld [vmem:[#allocation0] sm:$0x1] }
  0x9f   :  { %100 = vst [vmem:[%s208_s1] sm:$0x1] %v97_v31 }

// kernel: twin_conv.1
= control target key start
LH: loop header
LB: loop body
LE: loop exit
PB: predicated region body
PF: predicated region fallthrough
CT: control target
= control target key end

     0   :  { %s454_s12 = smov 0   ;;  %s569_s0 = inlined_call_operand.vmem [shape: bf16[2,18,72], index: 0, kind: input, shape index: {}]   ;;  %s570_s1 = inlined_call_operand.vmem [shape: f32[3,72,128], index: 1, kind: input, shape index: {}]   ;;  %s571_s2 = inlined_call_operand.vmem [shape: f32[1,128], index: 2, kind: input, shape index: {}]   ;;  %s572_s3 = inlined_call_operand.vmem [shape: f32[2,16,128], index: 3, kind: output, shape index: {}]  }
   0x1 LB: > { %s368_s13 = sadd.s32 4294967295, %s432_s12   ;;  %p372_p0 = scmp.ge.s32.totalorder %s432_s12, 1  ;;  %s432_s12 = sphi %s454_s12, %s13_s12  }
   0x2   : > { %p137_p1 = scmp.lt.s32.totalorder %s432_s12, 3 }
   0x4   : > { %p138_p2 = pnand %p372_p0, %p137_p1 }
   0x5   : > { %p161_p3 = scmp.lt.s32.totalorder (!%p138_p2), %s368_s13, 1 }
   0x6   : > { %141 = sbr.rel (%p138_p2) target bundleno = 174 (0xae), region = 32 }
   0xb   : > { %v397_v0 = vld [vmem:[%s570_s1 + $0xd0] sm:$0xff]  ;;  %v396_v1 = vld [vmem:[%s570_s1 + $0xc8] sm:$0xff]  ;;  %v185_v3 = vld [vmem:[%s570_s1 + $0x40] sm:$0xff]  ;;  %s574_s13 = smov (!%p161_p3, %s368_s13), 1  ;;  %vm270_vm0 = vcmask 1045504   ;;  %vm199_vm1 = vcmask 1046528  }
   0xc   : > { %v384_v2 = vld [vmem:[%s570_s1 + $0x88] sm:$0xff]  ;;  %287 = vmatpush.msra.mxu2 %v397_v0  ;;  %v383_v4 = vld [vmem:[%s570_s1 + $0x80] sm:$0xff]  ;;  %244 = vmatpush.msra.mxu1 %v185_v3  ;;  %v184_v6 = vld [vmem:[%s570_s1 + $0x38] sm:$0xff]  ;;  %s416_s9 = smul.u32 12, %s574_s13  ;;  %vm205_vm2 = vcmask 588800   ;;  %s402_s22 = sshll.u32 %s574_s13, 4 }
   0xd   : > { %217 = vmatpush.msra.mxu0 %v384_v2  ;;  %v395_v5 = vld [vmem:[%s570_s1 + $0xc0] sm:$0xff]  ;;  %407 = vmatpush.msra.mxu3 %v384_v2  ;;  %v382_v7 = vld [vmem:[%s570_s1 + $0x78] sm:$0xff]  ;;  %v183_v8 = vld [vmem:[%s570_s1 + $0x30] sm:$0xff]  ;;  %s170_s27 = scalar_lea.vmem %s572_s3, %s402_s22 }
   0xe   : > { %288 = vmatpush.msra.mxu2 %v396_v1  ;;  %245 = vmatpush.msra.mxu1 %v184_v6  ;;  %v394_v9 = vld [vmem:[%s570_s1 + $0xb8] sm:$0xff]  ;;  %v381_v10 = vld [vmem:[%s570_s1 + $0x70] sm:$0xff]  ;;  %v182_v11 = vld [vmem:[%s570_s1 + $0x28] sm:$0xff]  ;;  %s165_s20 = scalar_lea.vmem %s569_s0, %s416_s9 }
   0xf   : > { %218 = vmatpush.msra.mxu0 %v383_v4  ;;  %408 = vmatpush.msra.mxu3 %v383_v4  ;;  %v393_v12 = vld [vmem:[%s570_s1 + $0xb0] sm:$0xff]  ;;  %v380_v13 = vld [vmem:[%s570_s1 + $0x68] sm:$0xff]  ;;  %v181_v14 = vld [vmem:[%s570_s1 + $0x20] sm:$0xff] }
  0x10   : > { %289 = vmatpush.msra.mxu2 %v395_v5  ;;  %246 = vmatpush.msra.mxu1 %v183_v8  ;;  %v404_v15 = vld [vmem:[%s165_s20] sm:$0xff]   ;;  %v392_v16 = vld [vmem:[%s570_s1 + $0xa8] sm:$0xff]  ;;  %v180_v20 = vld [vmem:[%s570_s1 + $0x18] sm:$0xff] }
  0x11   : > { %219 = vmatpush.msra.mxu0 %v382_v7  ;;  %409 = vmatpush.msra.mxu3 %v382_v7  ;;  %v379_v17 = vld [vmem:[%s570_s1 + $0x60] sm:$0xff]  ;;  %v405_v18 = vunpack.c.l.bf16 %v404_v15  ;;  %v406_v19 = vunpack.c.h.bf16 %v404_v15  ;;  %v173_v21 = vld [vmem:[%s165_s20 + $0x8] sm:$0x1]  ;;  %v378_v23 = vld [vmem:[%s570_s1 + $0x58] sm:$0xff] }
  0x12   : > { %290 = vmatpush.msra.mxu2 %v394_v9  ;;  %247 = vmatpush.msra.mxu1 %v182_v11  ;;  %v391_v22 = vld [vmem:[%s570_s1 + $0xa0] sm:$0xff]  ;;  %v179_v24 = vld [vmem:[%s570_s1 + $0x10] sm:$0xff]  ;;  %v176_v27 = vunpack.c.l.bf16 %v173_v21  ;;  %v390_v28 = vld [vmem:[%s570_s1 + $0x98] sm:$0xff] }
  0x13   : > { %220 = vmatpush.msra.mxu0 %v381_v10  ;;  %410 = vmatpush.msra.mxu3 %v381_v10  ;;  %v271_v25 = vrot.slane %v405_v18, 2  ;;  %v272_v26 = vrot.slane %v406_v19, 2  ;;  %v377_v29 = vld [vmem:[%s570_s1 + $0x50] sm:$0xff]  ;;  %v200_v30 = vrot.slane %v405_v18, 1  ;;  %v201_v31 = vrot.slane %v406_v19, 1  ;;  %v178_v32 = vld [vmem:[%s570_s1 + $0x8] sm:$0xff] }
  0x14   : > { %291 = vmatpush.msra.mxu2 %v393_v12  ;;  %248 = vmatpush.msra.mxu1 %v181_v14  ;;  %v389_v33 = vld [vmem:[%s570_s1 + $0x90] sm:$0xff]  ;;  %v376_v34 = vld [vmem:[%s570_s1 + $0x48] sm:$0xff]  ;;  %v203_v35 = vrot.slane %v176_v27, 1  ;;  %v177_v37 = vld [vmem:[%s570_s1] sm:$0xff]  ;;  %v274_v40 = vrot.slane %v176_v27, 2 }
  0x15   : > { %221 = vmatpush.msra.mxu0 %v380_v13  ;;  %411 = vmatpush.msra.mxu3 %v380_v13  ;;  %v273_v36 = vsel %vm270_vm0, %v271_v25, %v272_v26  ;;  %v202_v38 = vsel %vm199_vm1, %v200_v30, %v201_v31  ;;  %v425_v45 = vld [vmem:[%s571_s2] ss:$0 sm:$0xff] }
  0x16   : > { %292 = vmatpush.msra.mxu2 %v392_v16  ;;  %249 = vmatpush.msra.mxu1 %v180_v20  ;;  %v204_v39 = vsel %vm199_vm1, %v201_v31, %v203_v35  ;;  %v275_v41 = vsel %vm270_vm0, %v272_v26, %v274_v40 }
  0x17   : > { %222 = vmatpush.msra.mxu0 %v379_v17  ;;  %412 = vmatpush.msra.mxu3 %v379_v17 }
  0x18   : > { %293 = vmatpush.msra.mxu2 %v391_v22  ;;  %250 = vmatpush.msra.mxu1 %v179_v24 }
  0x19   : > { %223 = vmatpush.msra.mxu0 %v378_v23  ;;  %413 = vmatpush.msra.mxu3 %v378_v23 }
  0x1a   : > { %294 = vmatpush.msra.mxu2 %v390_v28  ;;  %251 = vmatpush.msra.mxu1 %v178_v32 }
  0x1b   : > { %224 = vmatpush.msra.mxu0 %v377_v29  ;;  %414 = vmatpush.msra.mxu3 %v377_v29 }
  0x1c   : > { %295 = vmatpush.msra.mxu2 %v389_v33  ;;  %252 = vmatpush.msra.mxu1 %v177_v37 }
  0x1d   : > { %225 = vmatpush.msra.mxu0 %v376_v34  ;;  %398 = vmatmul.msk.f32.vlgmr.msra.gmra.mxu2 %vm205_vm2, %v273_v36 }
  0x1e   : > { %385 = vmatmul.msk.f32.vlgmr.msra.gmra.mxu0 %vm205_vm2, %v202_v38  ;;  %387 = vmatmul.msk.f32.vlgmr.msra.gmra.mxu1 %vm205_vm2, %v405_v18 }
  0x1f   : > { %415 = vmatpush.msra.mxu3 %v376_v34 }
  0x20   : > { %386 = vmatmul.msk.f32.vlgmr.msra.gmra.mxu3 %vm205_vm2, %v204_v39 }
  0x25   : > { %399 = vmatmul.msk.f32.gmra.mxu2 %vm205_vm2, %v275_v41 }
  0x26   : > { %388 = vmatmul.msk.f32.gmra.mxu1 %vm205_vm2, %v406_v19 }
  0x9b   : > { %v227_v42 = vpop.f32.mrf.mxu0  ;;  %v254_v43 = vpop.f32.mrf.mxu1 }
  0x9c   : > { %v255_v44 = vadd.f32 %v254_v43, %v227_v42 }
  0xa0   : > { %v297_v46 = vpop.f32.mrf.mxu2 }
  0xa1   : > { %v303_v47 = vadd.f32 %v297_v46, %v255_v44 }
  0xa3   : > { %v309_v48 = vadd.f32 %v425_v45, %v303_v47  ;;  %v230_v49 = vpop.f32.mrf.mxu3  ;;  %v257_v50 = vpop.f32.mrf.mxu1 }
  0xa4   : > { %v258_v51 = vadd.f32 %v257_v50, %v230_v49 }
  0xa5   : > { %311 = vst [vmem:[%s170_s27] sm:$0xff] %v309_v48 }
  0xa8   : > { %v300_v52 = vpop.f32.mrf.mxu2 }
  0xa9   : > { %v304_v53 = vadd.f32 %v300_v52, %v258_v51 }
  0xab   : > { %v310_v54 = vadd.f32 %v425_v45, %v304_v53 }
  0xad   : > { %312 = vst [vmem:[%s170_s27 + $0x8] sm:$0xff] %v310_v54 }
  0xae PF: > { %s13_s12 = sadd.s32 1, %s432_s12  }
  0xaf   : > { %p10_p4 = scmp.ge.s32.totalorder %s13_s12, 4  }
  0xb1   :  { %12 = sbr.rel (!%p10_p4) target bundleno = 1 (0x1), region = 64 }

</bundles_post_ra>
